<compile_context>
chip_gen: v5e
topology: v5e:2x2
jax: 0.10.0
libtpu: 0.0.40
codegen_flags: <defaults>
</compile_context>

<pallas_src>
import functools
from typing import NamedTuple, Optional

import jax
import jax.numpy as jnp
from jax.experimental import pallas as pl
from jax.experimental.pallas import tpu as pltpu


class ModelOutput(NamedTuple):
    logits: jax.Array
    loss: Optional[jax.Array] = None


def _round_up(x: int, m: int) -> int:
    return ((x + m - 1) // m) * m


_LOSS_BLOCK = (8, 128)  # sublane/lane-aligned per-M-tile loss partial block


# ---------------------------------------------------------------------------
# Kernels
# ---------------------------------------------------------------------------
def _logits_kernel(x_ref, w_ref, b_ref, logits_ref, acc_ref):
    """logits = x @ W + b, tiled over (M tiles, K tiles)."""
    # program_id/num_programs only at kernel top level (not in pl.when bodies).
    k = pl.program_id(1)
    nk = pl.num_programs(1)

    @pl.when(k == 0)
    def _():
        acc_ref[...] = jnp.zeros_like(acc_ref)

    # X arrives f32 and is cast to bf16 here (saves a wrapper-side pad+cast
    # pass over the activations); W is already bf16.  f32 MXU accumulation.
    acc_ref[...] += jnp.dot(x_ref[...].astype(jnp.bfloat16), w_ref[...],
                            preferred_element_type=jnp.float32)

    @pl.when(k == nk - 1)
    def _():
        # Bias add only in the epilogue (hoisted out of the K loop).
        logits_ref[...] = (acc_ref[...] + b_ref[...]).astype(logits_ref.dtype)


def _logits_ce_kernel(x_ref, w_ref, b_ref, labels_ref,
                      logits_ref, loss_ref, acc_ref,
                      *, nc_true: int, inv_batch: float):
    """x @ W + b with a fused cross-entropy epilogue.

    Per M tile the masked log-softmax + NLL is reduced over the tile's rows
    and a single, already /batch-normalized partial is written as one
    lane-dense (8, 128) block; the wrapper sums one scalar per tile.
    Padded batch rows carry label == -1 and therefore contribute exactly 0,
    so no row masking (and no program_id in the epilogue) is needed.
    """
    k = pl.program_id(1)
    nk = pl.num_programs(1)

    @pl.when(k == 0)
    def _():
        acc_ref[...] = jnp.zeros_like(acc_ref)

    acc_ref[...] += jnp.dot(x_ref[...].astype(jnp.bfloat16), w_ref[...],
                            preferred_element_type=jnp.float32)

    @pl.when(k == nk - 1)
    def _():
        logits = acc_ref[...] + b_ref[...]                       # [tm, NCp] f32
        logits_ref[...] = logits.astype(logits_ref.dtype)

        # ----- fused cross-entropy (nn.CrossEntropyLoss, reduction='mean') --
        col = jax.lax.broadcasted_iota(jnp.int32, logits.shape, 1)
        masked = jnp.where(col < nc_true, logits, jnp.float32(-1e30))
        m = jnp.max(masked, axis=-1, keepdims=True)
        shifted = masked - m
        lse = jnp.log(jnp.sum(jnp.exp(shifted), axis=-1, keepdims=True))
        logprobs = shifted - lse                                  # [tm, NCp]
        onehot = (col == labels_ref[...]).astype(jnp.float32)     # [tm, NCp]
        nll = -jnp.sum(onehot * logprobs, axis=-1, keepdims=True)   # [tm, 1]
        tile_loss = jnp.sum(nll, axis=0, keepdims=True) * jnp.float32(inv_batch)
        loss_ref[...] = jnp.broadcast_to(tile_loss, loss_ref.shape)


# ---------------------------------------------------------------------------
# pallas_call plumbing
# ---------------------------------------------------------------------------
def _pick_m_tile(batch: int) -> int:
    """Large, sublane-aligned M tile; guarantees >=2 M tiles whenever the
    batch can be split so the 'parallel' axis feeds both v7x TensorCores."""
    b16 = _round_up(max(batch, 1), 16)
    if b16 >= 1024:
        return 512
    if b16 >= 32:
        return _round_up((b16 + 1) // 2, 16)
    return b16


def _classification_forward(x_flat, w_pad, b_pad, labels, *,
                            num_classes: int, tk: int):
    B, D = x_flat.shape
    Dp, NCp = w_pad.shape

    tm = _pick_m_tile(B)
    Bp = _round_up(B, tm)
    mt, kt = Bp // tm, Dp // tk

    # Pad the activations only when needed; keep them f32 (the bf16 cast
    # happens in-kernel, so the kernel reads 4 B/elem instead of an extra
    # wrapper pass of 4+2+2 B/elem).
    if (Bp, Dp) != (B, D):
        x = jnp.zeros((Bp, Dp), x_flat.dtype).at[:B, :D].set(x_flat)
    else:
        x = x_flat

    x_spec = pl.BlockSpec((tm, tk), lambda i, k: (i, k))
    w_spec = pl.BlockSpec((tk, NCp), lambda i, k: (k, 0))
    b_spec = pl.BlockSpec((1, NCp), lambda i, k: (0, 0))
    logits_spec = pl.BlockSpec((tm, NCp), lambda i, k: (i, 0))
    scratch = [pltpu.VMEM((tm, NCp), jnp.float32)]
    cparams = pltpu.CompilerParams(
        dimension_semantics=("parallel", "arbitrary"),
        vmem_limit_bytes=32 * 1024 * 1024,   # footprint ~10 MiB; safe on all gens
    )

    if labels is None:
        logits_pad = pl.pallas_call(
            _logits_kernel,
            out_shape=jax.ShapeDtypeStruct((Bp, NCp), jnp.float32),
            grid_spec=pltpu.PrefetchScalarGridSpec(
                num_scalar_prefetch=0,
                grid=(mt, kt),
                in_specs=[x_spec, w_spec, b_spec],
                out_specs=logits_spec,
                scratch_shapes=scratch),
            compiler_params=cparams,
        )(x, w_pad, b_pad)
        return logits_pad[:B, :num_classes], None

    # Padded rows get label == -1 -> zero contribution to the loss.
    labels_pad = jnp.full((Bp, 1), -1, jnp.int32).at[:B, 0].set(
        labels.astype(jnp.int32))
    labels_spec = pl.BlockSpec((tm, 1), lambda i, k: (i, 0))
    loss_spec = pl.BlockSpec(_LOSS_BLOCK, lambda i, k: (i, 0))

    kernel = functools.partial(_logits_ce_kernel,
                               nc_true=num_classes, inv_batch=1.0 / B)
    logits_pad, loss_tiles = pl.pallas_call(
        kernel,
        out_shape=(jax.ShapeDtypeStruct((Bp, NCp), jnp.float32),
                   jax.ShapeDtypeStruct((mt * _LOSS_BLOCK[0], _LOSS_BLOCK[1]),
                                        jnp.float32)),
        grid_spec=pltpu.PrefetchScalarGridSpec(
            num_scalar_prefetch=0,
            grid=(mt, kt),
            in_specs=[x_spec, w_spec, b_spec, labels_spec],
            out_specs=(logits_spec, loss_spec),
            scratch_shapes=scratch),
        compiler_params=cparams,
    )(x, w_pad, b_pad, labels_pad)

    # One already-normalized partial per M tile; trivial final sum.
    loss = jnp.sum(
        loss_tiles.reshape(mt, _LOSS_BLOCK[0], _LOSS_BLOCK[1])[:, 0, 0])
    return logits_pad[:B, :num_classes], loss


# ---------------------------------------------------------------------------
# Module wrapper
# ---------------------------------------------------------------------------
class ClassificationBaseModelPallas:
    """JAX/Pallas equivalent of ClassificationBaseModel.forward."""

    def __init__(self, in_channels: int, height: int, width: int,
                 num_classes: int, seed: int = 0):
        D = in_channels * height * width
        self.num_classes = num_classes
        self.feat_dim = D
        # Large K tile: each grid step moves MiBs (well above the ~0.35 us
        # fixed per-step cost) while the double-buffered footprint stays
        # ~10 MiB -- within the scoped-VMEM budget of v5e/v6e/v7x.
        self.tk = 2048 if D >= 2048 else _round_up(D, 128)
        Dp = _round_up(D, self.tk)
        NCp = _round_up(num_classes, 128)   # lane-dense class axis (keep 128)

        key = jax.random.PRNGKey(seed)
        kw, kb = jax.random.split(key)
        w = (jax.random.normal(kw, (D, num_classes), jnp.float32)
             * (1.0 / jnp.sqrt(jnp.float32(D))))
        b = jax.random.normal(kb, (1, num_classes), jnp.float32) * 0.01

        # Pad parameters ONCE at init; weights stored bf16 (halves HBM traffic
        # on the dominant W stream), bias kept f32 for the f32 epilogue add.
        self.w_pad = (jnp.zeros((Dp, NCp), jnp.float32)
                      .at[:D, :num_classes].set(w)
                      .astype(jnp.bfloat16))
        self.b_pad = jnp.zeros((1, NCp), jnp.float32).at[:, :num_classes].set(b)

    def __call__(self, pixel_values: jax.Array,
                 labels: Optional[jax.Array] = None) -> ModelOutput:
        # pixel_values: NCHW [B, C, H, W] (PyTorch convention) -> [B, D].
        B = pixel_values.shape[0]
        x_flat = pixel_values.reshape(B, -1).astype(jnp.float32)
        logits, loss = _classification_forward(
            x_flat, self.w_pad, self.b_pad, labels,
            num_classes=self.num_classes, tk=self.tk)
        if labels is None:
            return ModelOutput(logits=logits)
        return ModelOutput(logits=logits, loss=loss)


if __name__ == "__main__":
    B, C, H, W = 2, 4, 16, 16
    NUM_CLASSES = 10

    key = jax.random.PRNGKey(0)
    kx, kl = jax.random.split(key)
    pixel_values = jax.random.normal(kx, (B, C, H, W), jnp.float32)
    labels = jax.random.randint(kl, (B,), 0, NUM_CLASSES, jnp.int32)

    model = ClassificationBaseModelPallas(C, H, W, NUM_CLASSES, seed=0)

    # Path 1: labels=None -> logits only.
    out_no_labels = model(pixel_values)
    jax.block_until_ready(out_no_labels.logits)
    assert out_no_labels.loss is None
    assert out_no_labels.logits.shape == (B, NUM_CLASSES)

    # Path 2: with labels -> logits + scalar mean cross-entropy loss.
    out = model(pixel_values, labels)
    jax.block_until_ready(out.logits)
    jax.block_until_ready(out.loss)
    assert out.logits.shape == (B, NUM_CLASSES)
    assert out.loss.shape == ()

    # Reference with the same bf16-input / f32-accumulate numerics.
    x_flat = pixel_values.reshape(B, -1)
    w_ref = model.w_pad[: model.feat_dim, :NUM_CLASSES]   # bf16
    b_ref = model.b_pad[:, :NUM_CLASSES]                  # f32
    ref_logits = jnp.dot(x_flat.astype(jnp.bfloat16), w_ref,
                         preferred_element_type=jnp.float32) + b_ref
    ref_lp = jax.nn.log_softmax(ref_logits, axis=-1)
    ref_loss = -jnp.mean(ref_lp[jnp.arange(B), labels])

    assert jnp.allclose(out_no_labels.logits, ref_logits, atol=1e-3, rtol=1e-3)
    assert jnp.allclose(out.logits, ref_logits, atol=1e-3, rtol=1e-3)
    assert jnp.allclose(out.loss, ref_loss, atol=1e-4, rtol=1e-4)

    print("KERNEL_OK")
</pallas_src>

<mosaic_0001>
module attributes {stable_mosaic.version = 11 : i64} {
  func.func @_logits_kernel(%arg0: i32, %arg1: i32, %arg2: memref<16x1024xf32, #tpu.memory_space<vmem>>, %arg3: memref<1024x128xbf16, #tpu.memory_space<vmem>>, %arg4: memref<1x128xf32, #tpu.memory_space<vmem>>, %arg5: memref<16x128xf32, #tpu.memory_space<vmem>>, %arg6: memref<16x128xf32, #tpu.memory_space<vmem>>) attributes {dimension_semantics = [#tpu.dimension_semantics<parallel>, #tpu.dimension_semantics<arbitrary>], iteration_bounds = array<i64: 1, 1>, scalar_prefetch = 0 : i64, scratch_operands = 1 : i64, tpu.core_type = #tpu.core_type<tc>, window_params = [{transform_indices = @transform_0, window_bounds = array<i64: 16, 1024>}, {transform_indices = @transform_1, window_bounds = array<i64: 1024, 128>}, {pipeline_mode = #tpu.pipeline_mode<synchronous>, transform_indices = @transform_2, window_bounds = array<i64: 1, 128>}, {transform_indices = @transform_3, window_bounds = array<i64: 16, 128>}]} {
    %c0_i32 = arith.constant 0 : i32
    %0 = arith.cmpi eq, %arg1, %c0_i32 : i32
    %1 = arith.extui %0 : i1 to i32
    %c0_i32_0 = arith.constant 0 : i32
    %2 = arith.cmpi ne, %1, %c0_i32_0 : i32
    scf.if %2 {
      %cst_10 = arith.constant 0.000000e+00 : f32
      %13 = vector.broadcast %cst_10 : f32 to vector<16x128xf32>
      %c0_11 = arith.constant 0 : index
      %c0_12 = arith.constant 0 : index
      %14 = vector.load %arg6[%c0_11, %c0_12] : memref<16x128xf32, #tpu.memory_space<vmem>>, vector<16x128xf32>
      tpu.vector_store %arg6[%c0_11, %c0_12], %13 {strides = array<i32>} : memref<16x128xf32, #tpu.memory_space<vmem>>, vector<16x128xf32>,
    } else {
    }
    %c0 = arith.constant 0 : index
    %c0_1 = arith.constant 0 : index
    %3 = vector.load %arg6[%c0, %c0_1] : memref<16x128xf32, #tpu.memory_space<vmem>>, vector<16x128xf32>
    %c0_2 = arith.constant 0 : index
    %c0_3 = arith.constant 0 : index
    %4 = vector.load %arg2[%c0_2, %c0_3] : memref<16x1024xf32, #tpu.memory_space<vmem>>, vector<16x1024xf32>
    %5 = arith.truncf %4 : vector<16x1024xf32> to vector<16x1024xbf16>
    %c0_4 = arith.constant 0 : index
    %c0_5 = arith.constant 0 : index
    %6 = vector.load %arg3[%c0_4, %c0_5] : memref<1024x128xbf16, #tpu.memory_space<vmem>>, vector<1024x128xbf16>
    %cst = arith.constant dense<0.000000e+00> : vector<16x128xf32>
    %7 = tpu.matmul %5, %6, %cst {dimension_numbers = #tpu.dot_dimension_numbers<[1], [0], [0], [1], [0, 0, 1, 1], [], []>} : vector<16x1024xbf16>, vector<1024x128xbf16>, vector<16x128xf32> -> vector<16x128xf32>
    %8 = arith.addf %3, %7 : vector<16x128xf32>
    %c0_6 = arith.constant 0 : index
    %c0_7 = arith.constant 0 : index
    %9 = vector.load %arg6[%c0_6, %c0_7] : memref<16x128xf32, #tpu.memory_space<vmem>>, vector<16x128xf32>
    tpu.vector_store %arg6[%c0_6, %c0_7], %8 {strides = array<i32>} : memref<16x128xf32, #tpu.memory_space<vmem>>, vector<16x128xf32>,
    %c0_i32_8 = arith.constant 0 : i32
    %10 = arith.cmpi eq, %arg1, %c0_i32_8 : i32
    %11 = arith.extui %10 : i1 to i32
    %c0_i32_9 = arith.constant 0 : i32
    %12 = arith.cmpi ne, %11, %c0_i32_9 : i32
    scf.if %12 {
      %c0_10 = arith.constant 0 : index
      %c0_11 = arith.constant 0 : index
      %13 = vector.load %arg6[%c0_10, %c0_11] : memref<16x128xf32, #tpu.memory_space<vmem>>, vector<16x128xf32>
      %c0_12 = arith.constant 0 : index
      %c0_13 = arith.constant 0 : index
      %14 = vector.load %arg4[%c0_12, %c0_13] : memref<1x128xf32, #tpu.memory_space<vmem>>, vector<1x128xf32>
      %15 = vector.broadcast %14 : vector<1x128xf32> to vector<16x128xf32>
      %16 = arith.addf %13, %15 : vector<16x128xf32>
      %c0_14 = arith.constant 0 : index
      %c0_15 = arith.constant 0 : index
      %17 = vector.load %arg5[%c0_14, %c0_15] : memref<16x128xf32, #tpu.memory_space<vmem>>, vector<16x128xf32>
      tpu.vector_store %arg5[%c0_14, %c0_15], %16 {strides = array<i32>} : memref<16x128xf32, #tpu.memory_space<vmem>>, vector<16x128xf32>,
    } else {
    }
    return
  }
  func.func @transform_0(%arg0: i32, %arg1: i32) -> (i32, i32) {
    %c0_i32 = arith.constant 0 : i32
    return %arg0, %arg1 : i32, i32
  }
  func.func @transform_1(%arg0: i32, %arg1: i32) -> (i32, i32) {
    %c0_i32 = arith.constant 0 : i32
    %c0_i32_0 = arith.constant 0 : i32
    return %arg1, %c0_i32 : i32, i32
  }
  func.func @transform_2(%arg0: i32, %arg1: i32) -> (i32, i32) {
    %c0_i32 = arith.constant 0 : i32
    %c0_i32_0 = arith.constant 0 : i32
    %c0_i32_1 = arith.constant 0 : i32
    return %c0_i32, %c0_i32_0 : i32, i32
  }
  func.func @transform_3(%arg0: i32, %arg1: i32) -> (i32, i32) {
    %c0_i32 = arith.constant 0 : i32
    %c0_i32_0 = arith.constant 0 : i32
    return %arg0, %c0_i32 : i32, i32
  }
}

</mosaic_0001>

<bundles_post_ra>
// kernel: tpu_custom_call.1
= control target key start
LH: loop header
LB: loop body
LE: loop exit
PB: predicated region body
PF: predicated region fallthrough
CT: control target
= control target key end

     0   :  { %8 = vsyncpa [#allocation4], 0  ;;  %s1187_s0 = inlined_call_operand.hbm [shape: f32[16,1024], index: 0, kind: input, shape index: {}]   ;;  %s1188_s1 = inlined_call_operand.hbm [shape: bf16[1024,128], index: 1, kind: input, shape index: {}]   ;;  %s1189_s2 = inlined_call_operand.vmem [shape: f32[1,128], index: 2, kind: input, shape index: {}]   ;;  %s1190_s3 = inlined_call_operand.hbm [shape: f32[16,128], index: 3, kind: output, shape index: {}]  }
   0x1   :  { %9 = vsyncpa [#allocation7], 0 }
   0x2   :  { %10 = vsyncpa [#allocation5], 0  ;;  %s15_s14 = sshll.u32 %s1187_s0, 4  ;;  %s1147_s15 = smov [#allocation3]   ;;  %s16_s14 = int_to_ptr.hbm [resolvable:$true] %s15_s14 }
   0x3   :  { %s17_s16 = sshll.u32 %s1147_s15, 4  ;;  %s28_s19 = sshll.u32 %s1188_s1, 4  ;;  %s18_s16 = int_to_ptr.vmem [resolvable:$true] %s17_s16  ;;  %s29_s19 = int_to_ptr.hbm [resolvable:$true] %s28_s19 }
   0x4   :  { %s1148_s20 = smov 1024   ;;  %s1149_s21 = smov 64  }
   0x5   :  { %23 = dma.hbm_to_vmem [thread:$0]  %s16_s14, 2048, %s18_s16, [#allocation4], %s1148_s20, %s1148_s20, %s1149_s21  }
   0x6   :  { %s1150_s22 = smov [#allocation6]   ;;  %s1151_s24 = smov 4  }
   0x7   :  { %s30_s23 = sshll.u32 %s1150_s22, 4  ;;  %s31_s23 = int_to_ptr.vmem [resolvable:$true] %s30_s23 }
   0x8   :  { %36 = dma.hbm_to_vmem [thread:$0]  %s29_s19, 8192, %s31_s23, [#allocation7], %s1149_s21, %s1149_s21, %s1151_s24  }
   0x9   :  { %1141 = dma.done.wait [#allocation4], 2048  }
   0xa   :  { %1142 = vsyncadd [#allocation4], 4294965248 }
   0xb   :  { %1143 = dma.done.wait [#allocation7], 8192  }
   0xc   :  { %1144 = vsyncadd [#allocation7], 4294959104  ;;  %v1003_v0 = vld [vmem:[#allocation6 + $0x38] sm:$0xff]  ;;  %v1002_v4 = vld [vmem:[#allocation6 + $0x30] sm:$0xff]  ;;  %s1152_s25 = smov [#allocation8]   ;;  %s726_s29 = sshll.u32 %s1190_s3, 4  ;;  %s727_s29 = int_to_ptr.hbm [resolvable:$true] %s726_s29 }
   0xd   :  { %v1011_v1 = vld [vmem:[#allocation6 + $0x78] sm:$0xff]  ;;  %591 = vmatpush.bf16.msra.mxu0 %v1003_v0  ;;  %v1010_v5 = vld [vmem:[#allocation6 + $0x70] sm:$0xff]  ;;  %v1001_v8 = vld [vmem:[#allocation6 + $0x28] sm:$0xff]  ;;  %s724_s26 = sshll.u32 %s1152_s25, 4  ;;  %s1154_s30 = smov 8   ;;  %s725_s26 = int_to_ptr.vmem [resolvable:$true] %s724_s26 }
   0xe   :  { %v1019_v2 = vld [vmem:[#allocation6 + $0xb8] sm:$0xff]  ;;  %605 = vmatpush.bf16.msra.mxu1 %v1011_v1  ;;  %v1018_v6 = vld [vmem:[#allocation6 + $0xb0] sm:$0xff]  ;;  %v1009_v9 = vld [vmem:[#allocation6 + $0x68] sm:$0xff] }
   0xf   :  { %v1027_v3 = vld [vmem:[#allocation6 + $0xf8] sm:$0xff]  ;;  %619 = vmatpush.bf16.msra.mxu2 %v1019_v2  ;;  %v1026_v7 = vld [vmem:[#allocation6 + $0xf0] sm:$0xff]  ;;  %v1017_v10 = vld [vmem:[#allocation6 + $0xa8] sm:$0xff] }
  0x10   :  { %633 = vmatpush.bf16.msra.mxu3 %v1027_v3  ;;  %v1025_v11 = vld [vmem:[#allocation6 + $0xe8] sm:$0xff]  ;;  %v1000_v12 = vld [vmem:[#allocation6 + $0x20] sm:$0xff]  ;;  %v999_v16 = vld [vmem:[#allocation6 + $0x18] sm:$0xff] }
  0x11   :  { %592 = vmatpush.bf16.msra.mxu0 %v1002_v4  ;;  %v1008_v13 = vld [vmem:[#allocation6 + $0x60] sm:$0xff]  ;;  %v1007_v17 = vld [vmem:[#allocation6 + $0x58] sm:$0xff]  ;;  %v998_v20 = vld [vmem:[#allocation6 + $0x10] sm:$0xff] }
  0x12   :  { %606 = vmatpush.bf16.msra.mxu1 %v1010_v5  ;;  %v1016_v14 = vld [vmem:[#allocation6 + $0xa0] sm:$0xff]  ;;  %v1015_v18 = vld [vmem:[#allocation6 + $0x98] sm:$0xff]  ;;  %v1006_v21 = vld [vmem:[#allocation6 + $0x50] sm:$0xff] }
  0x13   :  { %620 = vmatpush.bf16.msra.mxu2 %v1018_v6  ;;  %v1024_v15 = vld [vmem:[#allocation6 + $0xe0] sm:$0xff]  ;;  %v1023_v19 = vld [vmem:[#allocation6 + $0xd8] sm:$0xff]  ;;  %v1014_v22 = vld [vmem:[#allocation6 + $0x90] sm:$0xff] }
  0x14   :  { %634 = vmatpush.bf16.msra.mxu3 %v1026_v7  ;;  %v1022_v23 = vld [vmem:[#allocation6 + $0xd0] sm:$0xff]  ;;  %v997_v24 = vld [vmem:[#allocation6 + $0x8] sm:$0xff]  ;;  %v996_v28 = vld [vmem:[#allocation6] sm:$0xff] }
  0x15   :  { %593 = vmatpush.bf16.msra.mxu0 %v1001_v8  ;;  %v1005_v25 = vld [vmem:[#allocation6 + $0x48] sm:$0xff]  ;;  %v1004_v29 = vld [vmem:[#allocation6 + $0x40] sm:$0xff]  ;;  %v1035_v32 = vld [vmem:[#allocation6 + $0x138] sm:$0xff] }
  0x16   :  { %607 = vmatpush.bf16.msra.mxu1 %v1009_v9  ;;  %v1013_v26 = vld [vmem:[#allocation6 + $0x88] sm:$0xff]  ;;  %v1012_v30 = vld [vmem:[#allocation6 + $0x80] sm:$0xff]  ;;  %v1043_v33 = vld [vmem:[#allocation6 + $0x178] sm:$0xff] }
  0x17   :  { %621 = vmatpush.bf16.msra.mxu2 %v1017_v10  ;;  %v1021_v27 = vld [vmem:[#allocation6 + $0xc8] sm:$0xff]  ;;  %v1020_v31 = vld [vmem:[#allocation6 + $0xc0] sm:$0xff]  ;;  %v57_v34 = vld [vmem:[#allocation3 + $0x10] sm:$0xff] }
  0x18   :  { %635 = vmatpush.bf16.msra.mxu3 %v1025_v11  ;;  %v65_v35 = vld [vmem:[#allocation3 + $0x50] sm:$0xff]  ;;  %v58_v36 = vld [vmem:[#allocation3 + $0x18] sm:$0xff]  ;;  %v55_v38 = vld [vmem:[#allocation3] sm:$0xff] }
  0x19   :  { %594 = vmatpush.bf16.msra.mxu0 %v1000_v12  ;;  %v66_v37 = vld [vmem:[#allocation3 + $0x58] sm:$0xff]  ;;  %v63_v39 = vld [vmem:[#allocation3 + $0x40] sm:$0xff]  ;;  %v56_v40 = vld [vmem:[#allocation3 + $0x8] sm:$0xff]  ;;  %v73_v44 = vpack.c.bf16 %v65_v35, %v57_v34 }
  0x1a   :  { %608 = vmatpush.bf16.msra.mxu1 %v1008_v13  ;;  %v64_v41 = vld [vmem:[#allocation3 + $0x48] sm:$0xff]  ;;  %v1051_v42 = vld [vmem:[#allocation6 + $0x1b8] sm:$0xff]  ;;  %v74_v45 = vpack.c.bf16 %v66_v37, %v58_v36  ;;  %v71_v46 = vpack.c.bf16 %v63_v39, %v55_v38  ;;  %v1034_v48 = vld [vmem:[#allocation6 + $0x130] sm:$0xff] }
  0x1b   :  { %622 = vmatpush.bf16.msra.mxu2 %v1016_v14  ;;  %v1059_v43 = vld [vmem:[#allocation6 + $0x1f8] sm:$0xff]  ;;  %v72_v47 = vpack.c.bf16 %v64_v41, %v56_v40  ;;  %v1042_v49 = vld [vmem:[#allocation6 + $0x170] sm:$0xff]  ;;  %v1033_v52 = vld [vmem:[#allocation6 + $0x128] sm:$0xff] }
  0x1c   :  { %636 = vmatpush.bf16.msra.mxu3 %v1024_v15  ;;  %v1050_v50 = vld [vmem:[#allocation6 + $0x1b0] sm:$0xff]  ;;  %v1041_v53 = vld [vmem:[#allocation6 + $0x168] sm:$0xff]  ;;  %v1032_v56 = vld [vmem:[#allocation6 + $0x120] sm:$0xff] }
  0x1d   :  { %595 = vmatpush.bf16.msra.mxu0 %v999_v16  ;;  %v1058_v51 = vld [vmem:[#allocation6 + $0x1f0] sm:$0xff]  ;;  %v1049_v54 = vld [vmem:[#allocation6 + $0x1a8] sm:$0xff]  ;;  %v1040_v57 = vld [vmem:[#allocation6 + $0x160] sm:$0xff] }
  0x1e   :  { %609 = vmatpush.bf16.msra.mxu1 %v1007_v17  ;;  %v1057_v55 = vld [vmem:[#allocation6 + $0x1e8] sm:$0xff]  ;;  %v1048_v58 = vld [vmem:[#allocation6 + $0x1a0] sm:$0xff]  ;;  %v1031_v60 = vld [vmem:[#allocation6 + $0x118] sm:$0xff] }
  0x1f   :  { %623 = vmatpush.bf16.msra.mxu2 %v1015_v18  ;;  %v1056_v59 = vld [vmem:[#allocation6 + $0x1e0] sm:$0xff]  ;;  %v1039_v61 = vld [vmem:[#allocation6 + $0x158] sm:$0xff]  ;;  %v1030_v0 = vld [vmem:[#allocation6 + $0x110] sm:$0xff] }
  0x20   :  { %637 = vmatpush.bf16.msra.mxu3 %v1023_v19  ;;  %v1047_v62 = vld [vmem:[#allocation6 + $0x198] sm:$0xff]  ;;  %v1038_v1 = vld [vmem:[#allocation6 + $0x150] sm:$0xff]  ;;  %v1029_v4 = vld [vmem:[#allocation6 + $0x108] sm:$0xff] }
  0x21   :  { %596 = vmatpush.bf16.msra.mxu0 %v998_v20  ;;  %v1055_v63 = vld [vmem:[#allocation6 + $0x1d8] sm:$0xff]  ;;  %v1046_v2 = vld [vmem:[#allocation6 + $0x190] sm:$0xff]  ;;  %v1037_v5 = vld [vmem:[#allocation6 + $0x148] sm:$0xff] }
  0x22   :  { %610 = vmatpush.bf16.msra.mxu1 %v1006_v21  ;;  %v1054_v3 = vld [vmem:[#allocation6 + $0x1d0] sm:$0xff]  ;;  %v1045_v6 = vld [vmem:[#allocation6 + $0x188] sm:$0xff]  ;;  %v1028_v8 = vld [vmem:[#allocation6 + $0x100] sm:$0xff] }
  0x23   :  { %624 = vmatpush.bf16.msra.mxu2 %v1014_v22  ;;  %v1053_v7 = vld [vmem:[#allocation6 + $0x1c8] sm:$0xff]  ;;  %v1036_v9 = vld [vmem:[#allocation6 + $0x140] sm:$0xff]  ;;  %v61_v16 = vld [vmem:[#allocation3 + $0x30] sm:$0xff] }
  0x24   :  { %638 = vmatpush.bf16.msra.mxu3 %v1022_v23  ;;  %v1044_v10 = vld [vmem:[#allocation6 + $0x180] sm:$0xff]  ;;  %v60_v14 = vld [vmem:[#allocation3 + $0x28] sm:$0xff]  ;;  %v69_v17 = vld [vmem:[#allocation3 + $0x70] sm:$0xff] }
  0x25   :  { %597 = vmatpush.bf16.msra.mxu0 %v997_v24  ;;  %v1052_v11 = vld [vmem:[#allocation6 + $0x1c0] sm:$0xff]  ;;  %v68_v15 = vld [vmem:[#allocation3 + $0x68] sm:$0xff]  ;;  %v62_v18 = vld [vmem:[#allocation3 + $0x38] sm:$0xff]  ;;  %v77_v22 = vpack.c.bf16 %v69_v17, %v61_v16 }
  0x26   :  { %611 = vmatpush.bf16.msra.mxu1 %v1005_v25  ;;  %v59_v12 = vld [vmem:[#allocation3 + $0x20] sm:$0xff]  ;;  %v70_v19 = vld [vmem:[#allocation3 + $0x78] sm:$0xff]  ;;  %v76_v21 = vpack.c.bf16 %v68_v15, %v60_v14 }
  0x27   :  { %625 = vmatpush.bf16.msra.mxu2 %v1013_v26  ;;  %v67_v13 = vld [vmem:[#allocation3 + $0x60] sm:$0xff]  ;;  %v78_v23 = vpack.c.bf16 %v70_v19, %v62_v18 }
  0x28   :  { %639 = vmatpush.bf16.msra.mxu3 %v1021_v27  ;;  %v75_v20 = vpack.c.bf16 %v67_v13, %v59_v12 }
  0x29   :  { %598 = vmatpush.bf16.msra.mxu0 %v996_v28 }
  0x2a   :  { %612 = vmatpush.bf16.msra.mxu1 %v1004_v29 }
  0x2b   :  { %626 = vmatpush.bf16.msra.mxu2 %v1012_v30 }
  0x2c   :  { %640 = vmatpush.bf16.msra.mxu3 %v1020_v31  ;;  %599 = vmatmul.bf16.vlgmr.msra.gmra.mxu0 %v71_v46 }
  0x2d   :  { %647 = vmatpush.bf16.msrb.mxu0 %v1035_v32  ;;  %613 = vmatmul.bf16.vlgmr.msra.gmra.mxu1 %v72_v47 }
  0x2e   :  { %661 = vmatpush.bf16.msrb.mxu1 %v1043_v33  ;;  %627 = vmatmul.bf16.vlgmr.msra.gmra.mxu2 %v73_v44 }
  0x2f   :  { %675 = vmatpush.bf16.msrb.mxu2 %v1051_v42  ;;  %641 = vmatmul.bf16.vlgmr.msra.gmra.mxu3 %v74_v45  ;;  %v1068_v45 = vld [vmem:[%s1189_s2] ss:$0 sm:$0xff]  ;;  %s1153_s2 = smov 128  }
  0x30   :  { %689 = vmatpush.bf16.msrb.mxu3 %v1059_v43 }
  0x31   :  { %648 = vmatpush.bf16.msrb.mxu0 %v1034_v48 }
  0x32   :  { %662 = vmatpush.bf16.msrb.mxu1 %v1042_v49 }
  0x33   :  { %676 = vmatpush.bf16.msrb.mxu2 %v1050_v50 }
  0x34   :  { %690 = vmatpush.bf16.msrb.mxu3 %v1058_v51 }
  0x35   :  { %649 = vmatpush.bf16.msrb.mxu0 %v1033_v52 }
  0x36   :  { %663 = vmatpush.bf16.msrb.mxu1 %v1041_v53 }
  0x37   :  { %677 = vmatpush.bf16.msrb.mxu2 %v1049_v54 }
  0x38   :  { %691 = vmatpush.bf16.msrb.mxu3 %v1057_v55 }
  0x39   :  { %650 = vmatpush.bf16.msrb.mxu0 %v1032_v56 }
  0x3a   :  { %664 = vmatpush.bf16.msrb.mxu1 %v1040_v57 }
  0x3b   :  { %678 = vmatpush.bf16.msrb.mxu2 %v1048_v58 }
  0x3c   :  { %692 = vmatpush.bf16.msrb.mxu3 %v1056_v59 }
  0x3d   :  { %651 = vmatpush.bf16.msrb.mxu0 %v1031_v60 }
  0x3e   :  { %665 = vmatpush.bf16.msrb.mxu1 %v1039_v61 }
  0x3f   :  { %679 = vmatpush.bf16.msrb.mxu2 %v1047_v62 }
  0x40   :  { %693 = vmatpush.bf16.msrb.mxu3 %v1055_v63 }
  0x41   :  { %652 = vmatpush.bf16.msrb.mxu0 %v1030_v0 }
  0x42   :  { %666 = vmatpush.bf16.msrb.mxu1 %v1038_v1 }
  0x43   :  { %680 = vmatpush.bf16.msrb.mxu2 %v1046_v2 }
  0x44   :  { %694 = vmatpush.bf16.msrb.mxu3 %v1054_v3 }
  0x45   :  { %653 = vmatpush.bf16.msrb.mxu0 %v1029_v4 }
  0x46   :  { %667 = vmatpush.bf16.msrb.mxu1 %v1037_v5 }
  0x47   :  { %681 = vmatpush.bf16.msrb.mxu2 %v1045_v6 }
  0x48   :  { %695 = vmatpush.bf16.msrb.mxu3 %v1053_v7 }
  0x49   :  { %654 = vmatpush.bf16.msrb.mxu0 %v1028_v8 }
  0x4a   :  { %668 = vmatpush.bf16.msrb.mxu1 %v1036_v9 }
  0x4b   :  { %682 = vmatpush.bf16.msrb.mxu2 %v1044_v10 }
  0x4c   :  { %696 = vmatpush.bf16.msrb.mxu3 %v1052_v11  ;;  %655 = vmatmul.bf16.vlgmr.msrb.gmra.mxu0 %v75_v20 }
  0x4d   :  { %669 = vmatmul.bf16.vlgmr.msrb.gmra.mxu1 %v76_v21 }
  0x4e   :  { %683 = vmatmul.bf16.vlgmr.msrb.gmra.mxu2 %v77_v22 }
  0x4f   :  { %697 = vmatmul.bf16.vlgmr.msrb.gmra.mxu3 %v78_v23 }
  0xa9   :  { %v600_v24 = vpop.f32.mrf.mxu0 }
  0xaa   :  { %v614_v25 = vpop.f32.mrf.mxu1 }
  0xab   :  { %v615_v28 = vadd.f32 %v614_v25, %v600_v24 }
  0xb1   :  { %v628_v26 = vpop.f32.mrf.mxu2  ;;  %v602_v29 = vpop.f32.mrf.mxu0 }
  0xb2   :  { %v642_v27 = vpop.f32.mrf.mxu3  ;;  %v616_v30 = vpop.f32.mrf.mxu1  ;;  %v629_v31 = vadd.f32 %v628_v26, %v615_v28 }
  0xb3   :  { %v617_v35 = vadd.f32 %v616_v30, %v602_v29 }
  0xb4   :  { %v643_v34 = vadd.f32 %v642_v27, %v629_v31 }
  0xb9   :  { %v630_v32 = vpop.f32.mrf.mxu2 }
  0xba   :  { %v644_v33 = vpop.f32.mrf.mxu3  ;;  %v631_v39 = vadd.f32 %v630_v32, %v617_v35 }
  0xbc   :  { %v645_v43 = vadd.f32 %v644_v33, %v631_v39 }
  0xc9   :  { %v656_v36 = vpop.f32.mrf.mxu0 }
  0xca   :  { %v657_v37 = vadd.f32 %v656_v36, %v643_v34  ;;  %v670_v38 = vpop.f32.mrf.mxu1 }
  0xcc   :  { %v671_v40 = vadd.f32 %v670_v38, %v657_v37 }
  0xd1   :  { %v684_v41 = vpop.f32.mrf.mxu2  ;;  %v658_v46 = vpop.f32.mrf.mxu0 }
  0xd2   :  { %v698_v42 = vpop.f32.mrf.mxu3  ;;  %v685_v44 = vadd.f32 %v684_v41, %v671_v40  ;;  %v659_v48 = vadd.f32 %v658_v46, %v645_v43  ;;  %v672_v50 = vpop.f32.mrf.mxu1 }
  0xd4   :  { %v699_v47 = vadd.f32 %v698_v42, %v685_v44  ;;  %v673_v51 = vadd.f32 %v672_v50, %v659_v48 }
  0xd6   :  { %v716_v49 = vadd.f32 %v1068_v45, %v699_v47 }
  0xd8   :  { %718 = vst [vmem:[#allocation8] sm:$0xff] %v716_v49 }
  0xd9   :  { %v686_v52 = vpop.f32.mrf.mxu2 }
  0xda   :  { %v687_v53 = vadd.f32 %v686_v52, %v673_v51  ;;  %v700_v54 = vpop.f32.mrf.mxu3 }
  0xdc   :  { %v701_v55 = vadd.f32 %v700_v54, %v687_v53 }
  0xde   :  { %v717_v56 = vadd.f32 %v1068_v45, %v701_v55 }
  0xe0   :  { %719 = vst [vmem:[#allocation8 + $0x8] sm:$0xff] %v717_v56 }
  0xe1   :  { %732 = dma.vmem_to_hbm [thread:$0]  %s725_s26, 256, %s727_s29, [#allocation5], %s1153_s2, %s1153_s2, %s1154_s30  }
  0xe2   :  { %1145 = dma.done.wait [#allocation5], 256  }
  0xe3   :  { %1146 = vsyncadd [#allocation5], 4294967040 }
  0xe4   :  { %737 = vsyncpa [#allocation4], 1 }
  0xe5   :  { %738 = vsyncpa [#allocation7], 1 }
  0xe6   :  { %739 = vsyncpa [#allocation5], 1 }

</bundles_post_ra>
